<compile_context>
chip_gen: v5e
topology: v5e:2x2
jax: 0.10.0
libtpu: 0.0.40
codegen_flags: <defaults>
</compile_context>

<pallas_src>
import functools

import jax
import jax.numpy as jnp
from jax.experimental import pallas as pl
from jax.experimental.pallas import tpu as pltpu


_VMEM_LIMIT_BYTES = 48 * 1024 * 1024  # <= v7x physical VMEM; plenty on v5e/v6e


def _round_up(x, m):
    return (x + m - 1) // m * m


# ---------------------------------------------------------------------------
# Pass 1: per-row squared norms + feature column sum (single stream over data).
# ---------------------------------------------------------------------------
def _stats_kernel(x_ref, csum_ref, norms_ref):
    @pl.when(pl.program_id(0) == 0)
    def _init():
        csum_ref[...] = jnp.zeros_like(csum_ref)

    x = x_ref[...]                                            # (t, d_pad) f32
    csum_ref[...] = csum_ref[...] + jnp.sum(x, axis=0, keepdims=True)
    norms_ref[...] = jnp.sum(x * x, axis=1, keepdims=True)    # (t, 1)


# ---------------------------------------------------------------------------
# Pass 2: upper-triangular pair tiles, multi-bandwidth RBF + signed reduction.
# ---------------------------------------------------------------------------
def _mmd_pair_kernel(ii_ref, jj_ref, inv_bw_ref,
                     x_ref, yt_ref, nr_ref, nc_ref, wr_ref, wc_ref,
                     out_ref, *, kernel_num, kernel_mul_int, use_geometric):
    s = pl.program_id(0)

    @pl.when(s == 0)
    def _init():
        out_ref[...] = jnp.zeros_like(out_ref)

    i = ii_ref[s]
    j = jj_ref[s]

    x = x_ref[...]                                            # (t, d_pad) f32
    yt = yt_ref[...]                                          # (d_pad, t) f32
    gram = jnp.dot(x, yt, preferred_element_type=jnp.float32)  # MXU: (t, t)
    l2 = nr_ref[...] + nc_ref[...] - 2.0 * gram               # (t,1)+(1,t)-(t,t)
    neg_l2 = -jnp.maximum(l2, 0.0)                            # clamp fp negatives

    if use_geometric:
        # Geometric bandwidth ladder: exp ONCE at the largest bandwidth, the
        # remaining kernels are integer powers obtained by repeated VPU
        # multiplies (for kernel_mul=2: e, e^2, e^4, e^8, e^16).
        e = jnp.exp(neg_l2 * inv_bw_ref[kernel_num - 1])
        ksum = e
        p = e
        for _ in range(kernel_num - 1):
            q = p
            for _ in range(kernel_mul_int - 1):
                q = q * p
            p = q
            ksum = ksum + p
    else:
        ksum = jnp.zeros_like(neg_l2)
        for k in range(kernel_num):
            ksum = ksum + jnp.exp(neg_l2 * inv_bw_ref[k])

    # Signed / weighted scalar reduction of this tile:
    #   loss contribution = sum_ab w_row[a] * w_col[b] * K[a, b]
    v = jnp.sum(ksum * wc_ref[...], axis=1, keepdims=True)    # lane reduce -> (t,1)
    partial = jnp.sum(v * wr_ref[...])
    sym = jnp.where(j > i, 2.0, 1.0)                          # symmetry: count twice
    out_ref[...] = out_ref[...] + sym * partial


def _pick_tile(n_real, d_pad, max_tile):
    # Single tile whenever the whole (padded) sample count fits.
    if n_real <= max_tile:
        return max(8, _round_up(n_real, 8))
    # Multi-tile: keep t a multiple of 128 (lane-dense (1,t)/(d,t) blocks) and
    # fit double-buffered (t, d_pad) slabs + (t,t) intermediates in the budget.
    budget = int(_VMEM_LIMIT_BYTES * 0.75)
    for t in (512, 384, 256, 128):
        if t > max_tile:
            continue
        need = 2 * 2 * t * d_pad * 4 + 6 * t * t * 4
        if need <= budget:
            return t
    return 128


def mmd_loss_rbf(source, target, kernel_mul=2.0, kernel_num=5, max_tile=512):
    """JAX/Pallas equivalent of MMD_loss(kernel_type='rbf').forward(source, target)."""
    assert source.ndim == 2 and target.ndim == 2
    assert source.shape[1] == target.shape[1]
    b_src, d = source.shape
    b_tgt = target.shape[0]
    n_real = b_src + b_tgt

    d_pad = _round_up(d, 128)

    total = jnp.concatenate(
        [source.astype(jnp.float32), target.astype(jnp.float32)], axis=0)
    # Mean-center the features: pairwise distances are invariant, but the
    # closed-form bandwidth and the gram-based l2 become numerically robust.
    total = total - jnp.mean(total, axis=0, keepdims=True)

    t = _pick_tile(n_real, d_pad, int(max_tile))
    n_pad = _round_up(n_real, t)
    nt = n_pad // t

    total = jnp.pad(total, ((0, n_pad - n_real), (0, d_pad - d)))
    total_t = total.T                                          # (d_pad, n_pad), one-time

    # ---- Pass 1: stats ------------------------------------------------------
    csum, norms = pl.pallas_call(
        _stats_kernel,
        out_shape=(jax.ShapeDtypeStruct((1, d_pad), jnp.float32),
                   jax.ShapeDtypeStruct((n_pad, 1), jnp.float32)),
        grid=(nt,),
        in_specs=[pl.BlockSpec((t, d_pad), lambda i: (i, 0))],
        out_specs=(pl.BlockSpec((1, d_pad), lambda i: (0, 0)),
                   pl.BlockSpec((t, 1), lambda i: (i, 0))),
        compiler_params=pltpu.CompilerParams(
            dimension_semantics=("arbitrary",),
            vmem_limit_bytes=_VMEM_LIMIT_BYTES),
    )(total)

    # Closed-form bandwidth (padded rows are zero after centering -> no effect
    # beyond what the exact formula already accounts for via n_real).
    ssq = jnp.sum(norms)
    sum_l2 = 2.0 * float(n_real) * ssq - 2.0 * jnp.sum(csum * csum)
    bandwidth = sum_l2 / float(n_real * n_real - n_real)
    bandwidth = bandwidth / (float(kernel_mul) ** (int(kernel_num) // 2))
    scales = jnp.asarray([float(kernel_mul) ** k for k in range(int(kernel_num))],
                         dtype=jnp.float32)
    inv_bw = (1.0 / (bandwidth * scales)).astype(jnp.float32)  # (kernel_num,)

    # Quadrant weights: loss = sum_ij w_i * w_j * K_ij
    w = jnp.concatenate([
        jnp.full((b_src,), 1.0 / b_src, dtype=jnp.float32),
        jnp.full((b_tgt,), -1.0 / b_tgt, dtype=jnp.float32),
        jnp.zeros((n_pad - n_real,), dtype=jnp.float32)])
    w_row = w.reshape(n_pad, 1)
    w_col = w.reshape(1, n_pad)
    norms_col = norms.reshape(1, n_pad)

    # Upper-triangular tile enumeration (static); only these steps run.
    ii_list, jj_list = [], []
    for a in range(nt):
        for b in range(a, nt):
            ii_list.append(a)
            jj_list.append(b)
    ns = len(ii_list)
    ii = jnp.asarray(ii_list, dtype=jnp.int32)
    jj = jnp.asarray(jj_list, dtype=jnp.int32)

    mul_int = int(round(float(kernel_mul)))
    use_geometric = (abs(float(kernel_mul) - mul_int) < 1e-9) and (1 <= mul_int <= 4)

    kernel = functools.partial(
        _mmd_pair_kernel,
        kernel_num=int(kernel_num),
        kernel_mul_int=mul_int if use_geometric else 2,
        use_geometric=use_geometric)

    partials = pl.pallas_call(
        kernel,
        out_shape=jax.ShapeDtypeStruct((8, 128), jnp.float32),
        grid_spec=pltpu.PrefetchScalarGridSpec(
            num_scalar_prefetch=3,
            grid=(ns,),
            in_specs=[
                pl.BlockSpec((t, d_pad), lambda s, ir, jr, br: (ir[s], 0)),   # rows
                pl.BlockSpec((d_pad, t), lambda s, ir, jr, br: (0, jr[s])),   # cols (pre-T)
                pl.BlockSpec((t, 1),     lambda s, ir, jr, br: (ir[s], 0)),   # row norms
                pl.BlockSpec((1, t),     lambda s, ir, jr, br: (0, jr[s])),   # col norms
                pl.BlockSpec((t, 1),     lambda s, ir, jr, br: (ir[s], 0)),   # row weights
                pl.BlockSpec((1, t),     lambda s, ir, jr, br: (0, jr[s])),   # col weights
            ],
            out_specs=pl.BlockSpec((8, 128), lambda s, ir, jr, br: (0, 0)),
        ),
        compiler_params=pltpu.CompilerParams(
            dimension_semantics=("arbitrary",),
            vmem_limit_bytes=_VMEM_LIMIT_BYTES),
    )(ii, jj, inv_bw, total, total_t, norms, norms_col, w_row, w_col)

    return partials[0, 0]


if __name__ == "__main__":
    key = jax.random.PRNGKey(0)
    k1, k2 = jax.random.split(key)
    source = jax.random.normal(k1, (8, 32), dtype=jnp.float32)
    target = jax.random.normal(k2, (8, 32), dtype=jnp.float32) + 0.5

    loss = jax.jit(mmd_loss_rbf)(source, target)
    jax.block_until_ready(loss)

    # Pure-JAX reference (same math as the PyTorch module).
    def _ref(src, tgt, kernel_mul=2.0, kernel_num=5):
        b = src.shape[0]
        total = jnp.concatenate([src, tgt], axis=0)
        n = total.shape[0]
        diff = total[None, :, :] - total[:, None, :]
        l2 = jnp.sum(diff * diff, axis=2)
        bw = jnp.sum(l2) / (n * n - n)
        bw = bw / (kernel_mul ** (kernel_num // 2))
        k = sum(jnp.exp(-l2 / (bw * kernel_mul ** i)) for i in range(kernel_num))
        return (jnp.mean(k[:b, :b]) + jnp.mean(k[b:, b:])
                - jnp.mean(k[:b, b:]) - jnp.mean(k[b:, :b]))

    ref = _ref(source, target)
    assert jnp.allclose(loss, ref, rtol=5e-4, atol=2e-5), (loss, ref)
    print("KERNEL_OK")
</pallas_src>

<mosaic_0001>
module attributes {stable_mosaic.version = 11 : i64} {
  func.func @_stats_kernel(%arg0: i32, %arg1: memref<16x128xf32, #tpu.memory_space<vmem>>, %arg2: memref<1x128xf32, #tpu.memory_space<vmem>>, %arg3: memref<16x1xf32, #tpu.memory_space<vmem>>) attributes {dimension_semantics = [#tpu.dimension_semantics<arbitrary>], iteration_bounds = array<i64: 1>, scalar_prefetch = 0 : i64, scratch_operands = 0 : i64, tpu.core_type = #tpu.core_type<tc>, window_params = [{transform_indices = @transform_0, window_bounds = array<i64: 16, 128>}, {pipeline_mode = #tpu.pipeline_mode<synchronous>, transform_indices = @transform_1, window_bounds = array<i64: 1, 128>}, {transform_indices = @transform_2, window_bounds = array<i64: 16, 1>}]} {
    %c0_i32 = arith.constant 0 : i32
    %0 = arith.cmpi eq, %arg0, %c0_i32 : i32
    %1 = arith.extui %0 : i1 to i32
    %c0_i32_0 = arith.constant 0 : i32
    %2 = arith.cmpi ne, %1, %c0_i32_0 : i32
    scf.if %2 {
      %cst_9 = arith.constant 0.000000e+00 : f32
      %13 = vector.broadcast %cst_9 : f32 to vector<1x128xf32>
      %c0_10 = arith.constant 0 : index
      %c0_11 = arith.constant 0 : index
      %14 = vector.load %arg2[%c0_10, %c0_11] : memref<1x128xf32, #tpu.memory_space<vmem>>, vector<1x128xf32>
      tpu.vector_store %arg2[%c0_10, %c0_11], %13 {strides = array<i32>} : memref<1x128xf32, #tpu.memory_space<vmem>>, vector<1x128xf32>,
    } else {
    }
    %c0 = arith.constant 0 : index
    %c0_1 = arith.constant 0 : index
    %3 = vector.load %arg1[%c0, %c0_1] : memref<16x128xf32, #tpu.memory_space<vmem>>, vector<16x128xf32>
    %c0_2 = arith.constant 0 : index
    %c0_3 = arith.constant 0 : index
    %4 = vector.load %arg2[%c0_2, %c0_3] : memref<1x128xf32, #tpu.memory_space<vmem>>, vector<1x128xf32>
    %cst = arith.constant dense<0.000000e+00> : vector<128xf32>
    %5 = vector.multi_reduction <add>, %3, %cst [0] : vector<16x128xf32> to vector<128xf32>
    %6 = vector.shape_cast %5 : vector<128xf32> to vector<1x128xf32>
    %7 = arith.addf %4, %6 : vector<1x128xf32>
    %c0_4 = arith.constant 0 : index
    %c0_5 = arith.constant 0 : index
    %8 = vector.load %arg2[%c0_4, %c0_5] : memref<1x128xf32, #tpu.memory_space<vmem>>, vector<1x128xf32>
    tpu.vector_store %arg2[%c0_4, %c0_5], %7 {strides = array<i32>} : memref<1x128xf32, #tpu.memory_space<vmem>>, vector<1x128xf32>,
    %9 = arith.mulf %3, %3 : vector<16x128xf32>
    %cst_6 = arith.constant dense<0.000000e+00> : vector<16xf32>
    %10 = vector.multi_reduction <add>, %9, %cst_6 [1] : vector<16x128xf32> to vector<16xf32>
    %11 = vector.shape_cast %10 : vector<16xf32> to vector<16x1xf32>
    %c0_7 = arith.constant 0 : index
    %c0_8 = arith.constant 0 : index
    %12 = vector.load %arg3[%c0_7, %c0_8] : memref<16x1xf32, #tpu.memory_space<vmem>>, vector<16x1xf32>
    tpu.vector_store %arg3[%c0_7, %c0_8], %11 {strides = array<i32>} : memref<16x1xf32, #tpu.memory_space<vmem>>, vector<16x1xf32>,
    return
  }
  func.func @transform_0(%arg0: i32) -> (i32, i32) {
    %c0_i32 = arith.constant 0 : i32
    %c0_i32_0 = arith.constant 0 : i32
    return %arg0, %c0_i32 : i32, i32
  }
  func.func @transform_1(%arg0: i32) -> (i32, i32) {
    %c0_i32 = arith.constant 0 : i32
    %c0_i32_0 = arith.constant 0 : i32
    %c0_i32_1 = arith.constant 0 : i32
    return %c0_i32, %c0_i32_0 : i32, i32
  }
  func.func @transform_2(%arg0: i32) -> (i32, i32) {
    %c0_i32 = arith.constant 0 : i32
    %c0_i32_0 = arith.constant 0 : i32
    return %arg0, %c0_i32 : i32, i32
  }
}

module attributes {stable_mosaic.version = 11 : i64} {
  func.func @_mmd_pair_kernel(%arg0: i32, %arg1: memref<1xi32, #tpu.memory_space<smem>>, %arg2: memref<1xi32, #tpu.memory_space<smem>>, %arg3: memref<5xf32, #tpu.memory_space<smem>>, %arg4: memref<16x128xf32, #tpu.memory_space<vmem>>, %arg5: memref<128x16xf32, #tpu.memory_space<vmem>>, %arg6: memref<16x1xf32, #tpu.memory_space<vmem>>, %arg7: memref<1x16xf32, #tpu.memory_space<vmem>>, %arg8: memref<16x1xf32, #tpu.memory_space<vmem>>, %arg9: memref<1x16xf32, #tpu.memory_space<vmem>>, %arg10: memref<8x128xf32, #tpu.memory_space<vmem>>) attributes {dimension_semantics = [#tpu.dimension_semantics<arbitrary>], iteration_bounds = array<i64: 1>, scalar_prefetch = 3 : i64, scratch_operands = 0 : i64, tpu.core_type = #tpu.core_type<tc>, window_params = [{transform_indices = @transform_0, window_bounds = array<i64: 16, 128>}, {transform_indices = @transform_1, window_bounds = array<i64: 128, 16>}, {transform_indices = @transform_2, window_bounds = array<i64: 16, 1>}, {transform_indices = @transform_3, window_bounds = array<i64: 1, 16>}, {transform_indices = @transform_4, window_bounds = array<i64: 16, 1>}, {transform_indices = @transform_5, window_bounds = array<i64: 1, 16>}, {pipeline_mode = #tpu.pipeline_mode<synchronous>, transform_indices = @transform_6, window_bounds = array<i64: 8, 128>}]} {
    %c0_i32 = arith.constant 0 : i32
    %0 = arith.cmpi eq, %arg0, %c0_i32 : i32
    %1 = arith.extui %0 : i1 to i32
    %c0_i32_0 = arith.constant 0 : i32
    %2 = arith.cmpi ne, %1, %c0_i32_0 : i32
    scf.if %2 {
      %cst_23 = arith.constant 0.000000e+00 : f32
      %52 = vector.broadcast %cst_23 : f32 to vector<8x128xf32>
      %c0_24 = arith.constant 0 : index
      %c0_25 = arith.constant 0 : index
      %53 = vector.load %arg10[%c0_24, %c0_25] : memref<8x128xf32, #tpu.memory_space<vmem>>, vector<8x128xf32>
      tpu.vector_store %arg10[%c0_24, %c0_25], %52 {strides = array<i32>} : memref<8x128xf32, #tpu.memory_space<vmem>>, vector<8x128xf32>,
    } else {
    }
    %3 = arith.index_cast %arg0 : i32 to index
    %4 = memref.load %arg1[%3] : memref<1xi32, #tpu.memory_space<smem>>
    %5 = arith.index_cast %arg0 : i32 to index
    %6 = memref.load %arg2[%5] : memref<1xi32, #tpu.memory_space<smem>>
    %c0 = arith.constant 0 : index
    %c0_1 = arith.constant 0 : index
    %7 = vector.load %arg4[%c0, %c0_1] : memref<16x128xf32, #tpu.memory_space<vmem>>, vector<16x128xf32>
    %c0_2 = arith.constant 0 : index
    %c0_3 = arith.constant 0 : index
    %8 = vector.load %arg5[%c0_2, %c0_3] : memref<128x16xf32, #tpu.memory_space<vmem>>, vector<128x16xf32>
    %cst = arith.constant dense<0.000000e+00> : vector<16x16xf32>
    %9 = tpu.matmul %7, %8, %cst {dimension_numbers = #tpu.dot_dimension_numbers<[1], [0], [0], [1], [0, 0, 1, 1], [], []>} : vector<16x128xf32>, vector<128x16xf32>, vector<16x16xf32> -> vector<16x16xf32>
    %c0_4 = arith.constant 0 : index
    %c0_5 = arith.constant 0 : index
    %10 = vector.load %arg6[%c0_4, %c0_5] : memref<16x1xf32, #tpu.memory_space<vmem>>, vector<16x1xf32>
    %c0_6 = arith.constant 0 : index
    %c0_7 = arith.constant 0 : index
    %11 = vector.load %arg7[%c0_6, %c0_7] : memref<1x16xf32, #tpu.memory_space<vmem>>, vector<1x16xf32>
    %12 = vector.broadcast %10 : vector<16x1xf32> to vector<16x16xf32>
    %13 = vector.broadcast %11 : vector<1x16xf32> to vector<16x16xf32>
    %14 = arith.addf %12, %13 : vector<16x16xf32>
    %cst_8 = arith.constant 2.000000e+00 : f32
    %15 = vector.broadcast %cst_8 : f32 to vector<16x16xf32>
    %16 = arith.mulf %15, %9 : vector<16x16xf32>
    %17 = arith.subf %14, %16 : vector<16x16xf32>
    %cst_9 = arith.constant 0.000000e+00 : f32
    %18 = vector.broadcast %cst_9 : f32 to vector<16x16xf32>
    %19 = arith.maximumf %17, %18 : vector<16x16xf32>
    %cst_10 = arith.constant 0.000000e+00 : f32
    %20 = vector.broadcast %cst_10 : f32 to vector<16x16xf32>
    %21 = arith.subf %20, %19 : vector<16x16xf32>
    %c4 = arith.constant 4 : index
    %22 = memref.load %arg3[%c4] : memref<5xf32, #tpu.memory_space<smem>>
    %23 = vector.broadcast %22 : f32 to vector<16x16xf32>
    %24 = arith.mulf %21, %23 : vector<16x16xf32>
    %25 = math.exp %24 : vector<16x16xf32>
    %26 = arith.mulf %25, %25 : vector<16x16xf32>
    %27 = arith.addf %25, %26 : vector<16x16xf32>
    %28 = arith.mulf %26, %26 : vector<16x16xf32>
    %29 = arith.addf %27, %28 : vector<16x16xf32>
    %30 = arith.mulf %28, %28 : vector<16x16xf32>
    %31 = arith.addf %29, %30 : vector<16x16xf32>
    %32 = arith.mulf %30, %30 : vector<16x16xf32>
    %33 = arith.addf %31, %32 : vector<16x16xf32>
    %c0_11 = arith.constant 0 : index
    %c0_12 = arith.constant 0 : index
    %34 = vector.load %arg9[%c0_11, %c0_12] : memref<1x16xf32, #tpu.memory_space<vmem>>, vector<1x16xf32>
    %35 = vector.broadcast %34 : vector<1x16xf32> to vector<16x16xf32>
    %36 = arith.mulf %33, %35 : vector<16x16xf32>
    %cst_13 = arith.constant dense<0.000000e+00> : vector<16xf32>
    %37 = vector.multi_reduction <add>, %36, %cst_13 [1] : vector<16x16xf32> to vector<16xf32>
    %38 = vector.shape_cast %37 : vector<16xf32> to vector<16x1xf32>
    %c0_14 = arith.constant 0 : index
    %c0_15 = arith.constant 0 : index
    %39 = vector.load %arg8[%c0_14, %c0_15] : memref<16x1xf32, #tpu.memory_space<vmem>>, vector<16x1xf32>
    %40 = arith.mulf %38, %39 : vector<16x1xf32>
    %41 = vector.shape_cast %40 : vector<16x1xf32> to vector<1x16x1xf32>
    %cst_16 = arith.constant dense<0.000000e+00> : vector<1xf32>
    %42 = vector.multi_reduction <add>, %41, %cst_16 [1, 2] : vector<1x16x1xf32> to vector<1xf32>
    %43 = vector.shape_cast %42 : vector<1xf32> to vector<1x1x1xf32>
    %44 = vector.extract %43[0, 0, 0] : f32 from vector<1x1x1xf32>
    %45 = arith.cmpi sgt, %6, %4 : i32
    %cst_17 = arith.constant 2.000000e+00 : f32
    %cst_18 = arith.constant 1.000000e+00 : f32
    %46 = arith.select %45, %cst_17, %cst_18 : f32
    %c0_19 = arith.constant 0 : index
    %c0_20 = arith.constant 0 : index
    %47 = vector.load %arg10[%c0_19, %c0_20] : memref<8x128xf32, #tpu.memory_space<vmem>>, vector<8x128xf32>
    %48 = arith.mulf %46, %44 : f32
    %49 = vector.broadcast %48 : f32 to vector<8x128xf32>
    %50 = arith.addf %47, %49 : vector<8x128xf32>
    %c0_21 = arith.constant 0 : index
    %c0_22 = arith.constant 0 : index
    %51 = vector.load %arg10[%c0_21, %c0_22] : memref<8x128xf32, #tpu.memory_space<vmem>>, vector<8x128xf32>
    tpu.vector_store %arg10[%c0_21, %c0_22], %50 {strides = array<i32>} : memref<8x128xf32, #tpu.memory_space<vmem>>, vector<8x128xf32>,
    return
  }
  func.func @transform_0(%arg0: i32, %arg1: memref<1xi32, #tpu.memory_space<smem>>, %arg2: memref<1xi32, #tpu.memory_space<smem>>, %arg3: memref<5xf32, #tpu.memory_space<smem>>) -> (i32, i32) {
    %0 = arith.index_cast %arg0 : i32 to index
    %1 = memref.load %arg1[%0] : memref<1xi32, #tpu.memory_space<smem>>
    %c0_i32 = arith.constant 0 : i32
    %c0_i32_0 = arith.constant 0 : i32
    return %1, %c0_i32 : i32, i32
  }
  func.func @transform_1(%arg0: i32, %arg1: memref<1xi32, #tpu.memory_space<smem>>, %arg2: memref<1xi32, #tpu.memory_space<smem>>, %arg3: memref<5xf32, #tpu.memory_space<smem>>) -> (i32, i32) {
    %0 = arith.index_cast %arg0 : i32 to index
    %1 = memref.load %arg2[%0] : memref<1xi32, #tpu.memory_space<smem>>
    %c0_i32 = arith.constant 0 : i32
    %c0_i32_0 = arith.constant 0 : i32
    return %c0_i32, %1 : i32, i32
  }
  func.func @transform_2(%arg0: i32, %arg1: memref<1xi32, #tpu.memory_space<smem>>, %arg2: memref<1xi32, #tpu.memory_space<smem>>, %arg3: memref<5xf32, #tpu.memory_space<smem>>) -> (i32, i32) {
    %0 = arith.index_cast %arg0 : i32 to index
    %1 = memref.load %arg1[%0] : memref<1xi32, #tpu.memory_space<smem>>
    %c0_i32 = arith.constant 0 : i32
    %c0_i32_0 = arith.constant 0 : i32
    return %1, %c0_i32 : i32, i32
  }
  func.func @transform_3(%arg0: i32, %arg1: memref<1xi32, #tpu.memory_space<smem>>, %arg2: memref<1xi32, #tpu.memory_space<smem>>, %arg3: memref<5xf32, #tpu.memory_space<smem>>) -> (i32, i32) {
    %0 = arith.index_cast %arg0 : i32 to index
    %1 = memref.load %arg2[%0] : memref<1xi32, #tpu.memory_space<smem>>
    %c0_i32 = arith.constant 0 : i32
    %c0_i32_0 = arith.constant 0 : i32
    return %c0_i32, %1 : i32, i32
  }
  func.func @transform_4(%arg0: i32, %arg1: memref<1xi32, #tpu.memory_space<smem>>, %arg2: memref<1xi32, #tpu.memory_space<smem>>, %arg3: memref<5xf32, #tpu.memory_space<smem>>) -> (i32, i32) {
    %0 = arith.index_cast %arg0 : i32 to index
    %1 = memref.load %arg1[%0] : memref<1xi32, #tpu.memory_space<smem>>
    %c0_i32 = arith.constant 0 : i32
    %c0_i32_0 = arith.constant 0 : i32
    return %1, %c0_i32 : i32, i32
  }
  func.func @transform_5(%arg0: i32, %arg1: memref<1xi32, #tpu.memory_space<smem>>, %arg2: memref<1xi32, #tpu.memory_space<smem>>, %arg3: memref<5xf32, #tpu.memory_space<smem>>) -> (i32, i32) {
    %0 = arith.index_cast %arg0 : i32 to index
    %1 = memref.load %arg2[%0] : memref<1xi32, #tpu.memory_space<smem>>
    %c0_i32 = arith.constant 0 : i32
    %c0_i32_0 = arith.constant 0 : i32
    return %c0_i32, %1 : i32, i32
  }
  func.func @transform_6(%arg0: i32, %arg1: memref<1xi32, #tpu.memory_space<smem>>, %arg2: memref<1xi32, #tpu.memory_space<smem>>, %arg3: memref<5xf32, #tpu.memory_space<smem>>) -> (i32, i32) {
    %c0_i32 = arith.constant 0 : i32
    %c0_i32_0 = arith.constant 0 : i32
    %c0_i32_1 = arith.constant 0 : i32
    return %c0_i32, %c0_i32_0 : i32, i32
  }
}

</mosaic_0001>

<bundles_post_ra>
// kernel: mmd_loss_rbf.2
= control target key start
LH: loop header
LB: loop body
LE: loop exit
PB: predicated region body
PF: predicated region fallthrough
CT: control target
= control target key end

     0   :  { %v45_v0 = vmov 0.0   ;;  %vm33_vm0 = vcmask 7168   ;;  %s82_s0 = inlined_call_operand.vmem [shape: f32[16,128], index: 0, kind: input, shape index: {}]   ;;  %s83_s1 = inlined_call_operand.vmem [shape: f32[1,128], index: 1, kind: output, shape index: {0}]   ;;  %s84_s2 = inlined_call_operand.vmem [shape: f32[16,1], index: 2, kind: output, shape index: {1}]  }
   0x1   :  { %14 = vst [vmem:[%s83_s1] sm:$0x1] %v45_v0  ;;  %v15_v1 = vld [vmem:[%s82_s0] sm:$0xff]  ;;  %v16_v2 = vld [vmem:[%s82_s0 + $0x8] sm:$0xff] }
   0x2   :  { %v27_v3 = vmul.f32 %v15_v1, %v15_v1  ;;  %v18_v4 = vadd.f32 %v16_v2, %v15_v1  ;;  %v28_v8 = vmul.f32 %v16_v2, %v16_v2 }
   0x4   :  { %29 = vadd.xlane.f32.xlu0 %v27_v3  ;;  %v19_v5 = vrot.slane %v18_v4, 4 }
   0x6   :  { %v20_v6 = vadd.f32 %v19_v5, %v18_v4 }
   0x8   :  { %v21_v7 = vrot.slane %v20_v6, 2  ;;  %v17_v11 = vld [vmem:[%s83_s1] sm:$0x1] }
   0xa   :  { %v22_v9 = vadd.f32 %v21_v7, %v20_v6 }
   0xc   :  { %v23_v10 = vrot.slane %v22_v9, 1  ;;  %31 = vadd.xlane.f32.xlu0 %v28_v8 }
   0xe   :  { %v24_v12 = vadd.f32 %v23_v10, %v22_v9 }
  0x10   :  { %v25_v13 = vadd.f32 %v24_v12, %v17_v11 }
  0x12   :  { %26 = vst [vmem:[%s83_s1] sm:$0x1] %v25_v13 }
  0x77   :  { %v30_v14 = vpop.xlane.xlu0 %29 }
  0x78   :  { %34 = vst.msk [vmem:[%s84_s2] sm:$0xff] %vm33_vm0, %v30_v14 }
  0x7f   :  { %v32_v15 = vpop.xlane.xlu0 %31 }
  0x80   :  { %35 = vst.msk [vmem:[%s84_s2 + $0x8] sm:$0xff] %vm33_vm0, %v32_v15 }

// kernel: mmd_loss_rbf.3
= control target key start
LH: loop header
LB: loop body
LE: loop exit
PB: predicated region body
PF: predicated region fallthrough
CT: control target
= control target key end

     0   :  { %s366_s12 = smov [#allocation5]   ;;  %s495_s0 = inlined_call_operand.<no memory space> [shape: s32[1], index: 0, kind: input, shape index: {}, may-alias: {0,1}]   ;;  %s496_s1 = inlined_call_operand.<no memory space> [shape: s32[1], index: 1, kind: input, shape index: {}, may-alias: {0,1}]   ;;  %s497_s2 = inlined_call_operand.vmem [shape: f32[5], index: 2, kind: input, shape index: {}]   ;;  %s498_s3 = inlined_call_operand.vmem [shape: f32[16,128], index: 3, kind: input, shape index: {}]   ;;  %s499_s4 = inlined_call_operand.vmem [shape: f32[128,16], index: 4, kind: input, shape index: {}]   ;;  %s500_s5 = inlined_call_operand.vmem [shape: f32[16,1], index: 5, kind: input, shape index: {}]   ;;  %s501_s6 = inlined_call_operand.vmem [shape: f32[1,16], index: 6, kind: input, shape index: {}]   ;;  %s502_s7 = inlined_call_operand.vmem [shape: f32[16,1], index: 7, kind: input, shape index: {}]   ;;  %s503_s8 = inlined_call_operand.vmem [shape: f32[1,16], index: 8, kind: input, shape index: {}]   ;;  %s504_s9 = inlined_call_operand.vmem [shape: f32[8,128], index: 9, kind: output, shape index: {}]  }
   0x1   :  { %s17_s11 = sshll.u32 %s497_s2, 4  ;;  %s18_s11 = int_to_ptr.vmem [resolvable:$true] %s17_s11 }
   0x2   :  { %20 = dma.vmem_to_smem %s18_s11, 16, %s366_s12, [#allocation2] }
   0x3   :  { %364 = dma.done.wait [#allocation2], 16 }
   0x4   :  { %365 = vsyncadd [#allocation2], 4294967280 }
   0x5   :  { %23 = sfence }
   0x6   :  { %p116_p0 = scmp.lt.s32.totalorder %s496_s1, 0  ;;  %s316_s17 = sshll.u32 %s495_s0, 1  ;;  %v367_v3 = vmov 0   ;;  %vm251_vm0 = vcmask 130048   ;;  %vm262_vm1 = vcmask 7168  }
   0x7   :  { %p109_p1 = scmp.lt.s32.totalorder %s316_s17, 1  ;;  %345 = vset.pattern.permute.xlu0 %v367_v3  ;;  %p275_p2 = scmp.gt.s32.totalorder %s496_s1, %s495_s0 }
   0x8   :  { %s430_s20 = scalar_select %p116_p0, %s496_s1, 0 }
   0x9   :  { %s506_s17 = smov (!%p109_p1, %s316_s17), 1 }
   0xa   :  { %s318_s2 = sshll.u32 %s430_s20, 3  ;;  %s132_s23 = scalar_lea.vmem %s501_s6, %s430_s20 }
   0xb   :  { %s440_s26 = scalar_lea.vmem %s499_s4, %s318_s2  ;;  %s445_s27 = sshll.u32 %s506_s17, 3  ;;  %v346_v22 = vld [vmem:[%s132_s23] ss:$0 sm:$0xff] }
   0xc   :  { %v171_v0 = vld [vmem:[%s440_s26 + $0x78] sm:$0xff]  ;;  %v170_v1 = vld [vmem:[%s440_s26 + $0x70] sm:$0xff]  ;;  %v169_v2 = vld [vmem:[%s440_s26 + $0x68] sm:$0xff]  ;;  %s126_s29 = scalar_lea.vmem %s500_s5, %s445_s27  ;;  %s112_s10 = scalar_lea.vmem %s498_s3, %s445_s27 }
   0xd   :  { %172 = vmatpush.msra.mxu0 %v171_v0  ;;  %324 = vmatpush.msra.mxu1 %v171_v0  ;;  %v168_v4 = vld [vmem:[%s440_s26 + $0x60] sm:$0xff]  ;;  %v167_v5 = vld [vmem:[%s440_s26 + $0x58] sm:$0xff]  ;;  %v166_v7 = vld [vmem:[%s440_s26 + $0x50] sm:$0xff]  ;;  %s145_s13 = scalar_lea.vmem %s503_s8, %s430_s20  ;;  %s323_s3 = sld [smem:[#allocation5 + $0x4]] }
   0xe   :  { %v195_v6 = vld [vmem:[%s126_s29] sm:$0xff]  ;;  %v165_v8 = vld [vmem:[%s440_s26 + $0x48] sm:$0xff]  ;;  %v163_v11 = vld [vmem:[%s440_s26 + $0x38] sm:$0xff]  ;;  %s139_s19 = scalar_lea.vmem %s502_s7, %s445_s27 }
   0xf   :  { %173 = vmatpush.msra.mxu0 %v170_v1  ;;  %325 = vmatpush.msra.mxu1 %v170_v1  ;;  %v164_v9 = vld [vmem:[%s440_s26 + $0x40] sm:$0xff]  ;;  %v196_v10 = vld [vmem:[%s126_s29 + $0x8] sm:$0xff]  ;;  %v162_v12 = vld [vmem:[%s440_s26 + $0x30] sm:$0xff]  ;;  %s276_s21 = scalar_select %p275_p2, 2.0, 1.0 }
  0x10   :  { %200 = vperm.xlu0 %345, %v195_v6   ;;  %v161_v13 = vld [vmem:[%s440_s26 + $0x28] sm:$0xff]  ;;  %v160_v14 = vld [vmem:[%s440_s26 + $0x20] sm:$0xff]  ;;  %v159_v15 = vld [vmem:[%s440_s26 + $0x18] sm:$0xff] }
  0x11   :  { %174 = vmatpush.msra.mxu0 %v169_v2  ;;  %326 = vmatpush.msra.mxu1 %v169_v2  ;;  %v158_v16 = vld [vmem:[%s440_s26 + $0x10] sm:$0xff]  ;;  %v157_v17 = vld [vmem:[%s440_s26 + $0x8] sm:$0xff]  ;;  %v156_v18 = vld [vmem:[%s440_s26] sm:$0xff] }
  0x12   :  { %v154_v19 = vld [vmem:[%s112_s10] sm:$0xff]  ;;  %v155_v20 = vld [vmem:[%s112_s10 + $0x8] sm:$0xff] }
  0x13   :  { %175 = vmatpush.msra.mxu0 %v168_v4  ;;  %327 = vmatpush.msra.mxu1 %v168_v4  ;;  %v222_v34 = vstv %s323_s3  ;;  %v347_v55 = vld [vmem:[%s145_s13] ss:$0 sm:$0xff]  ;;  %v259_v2 = vld [vmem:[%s139_s19 + $0x8] sm:$0xff] }
  0x14   :  { %v258_v1 = vld [vmem:[%s139_s19] sm:$0xff] }
  0x15   :  { %176 = vmatpush.msra.mxu0 %v167_v5  ;;  %328 = vmatpush.msra.mxu1 %v167_v5 }
  0x17   :  { %177 = vmatpush.msra.mxu0 %v166_v7  ;;  %329 = vmatpush.msra.mxu1 %v166_v7 }
  0x18   :  { %205 = vperm.xlu0 %345, %v196_v10  }
  0x19   :  { %178 = vmatpush.msra.mxu0 %v165_v8  ;;  %330 = vmatpush.msra.mxu1 %v165_v8 }
  0x1b   :  { %179 = vmatpush.msra.mxu0 %v164_v9  ;;  %331 = vmatpush.msra.mxu1 %v164_v9 }
  0x1d   :  { %180 = vmatpush.msra.mxu0 %v163_v11  ;;  %332 = vmatpush.msra.mxu1 %v163_v11 }
  0x1f   :  { %181 = vmatpush.msra.mxu0 %v162_v12  ;;  %333 = vmatpush.msra.mxu1 %v162_v12 }
  0x21   :  { %182 = vmatpush.msra.mxu0 %v161_v13  ;;  %334 = vmatpush.msra.mxu1 %v161_v13 }
  0x23   :  { %183 = vmatpush.msra.mxu0 %v160_v14  ;;  %335 = vmatpush.msra.mxu1 %v160_v14 }
  0x25   :  { %184 = vmatpush.msra.mxu0 %v159_v15  ;;  %336 = vmatpush.msra.mxu1 %v159_v15 }
  0x27   :  { %185 = vmatpush.msra.mxu0 %v158_v16  ;;  %337 = vmatpush.msra.mxu1 %v158_v16 }
  0x29   :  { %186 = vmatpush.msra.mxu0 %v157_v17  ;;  %338 = vmatpush.msra.mxu1 %v157_v17 }
  0x2b   :  { %187 = vmatpush.msra.mxu0 %v156_v18  ;;  %339 = vmatpush.msra.mxu1 %v156_v18 }
  0x2c   :  { %188 = vmatmul.f32.vlgmr.msra.gmra.mxu0 %v154_v19  ;;  %191 = vmatmul.f32.vlgmr.msra.gmra.mxu1 %v155_v20 }
  0x82   :  { %v201_v21 = vpop.permute.xlu0 %200 }
  0x83   :  { %v211_v24 = vadd.f32 %v346_v22, %v201_v21 }
  0x8a   :  { %v206_v23 = vpop.permute.xlu0 %205 }
  0x8b   :  { %v212_v25 = vadd.f32 %v346_v22, %v206_v23 }
  0xa9   :  { %v189_v26 = vpop.f32.mrf.mxu0  ;;  %v192_v27 = vpop.f32.mrf.mxu1 }
  0xaa   :  { %v213_v28 = vmul.f32 2.0, %v189_v26  ;;  %v214_v29 = vmul.f32 2.0, %v192_v27 }
  0xac   :  { %v215_v30 = vsub.f32 %v211_v24, %v213_v28  ;;  %v216_v31 = vsub.f32 %v212_v25, %v214_v29 }
  0xae   :  { %v217_v32 = vmax.f32 %v215_v30, 0.0  ;;  %v218_v33 = vmax.f32 %v216_v31, 0.0 }
  0xb0   :  { %v219_v35 = vsub.f32 0.0, %v217_v32  ;;  %v220_v36 = vsub.f32 0.0, %v218_v33 }
  0xb2   :  { %v223_v37 = vmul.f32 %v222_v34, %v219_v35  ;;  %v224_v38 = vmul.f32 %v222_v34, %v220_v36 }
  0xb4   :  { %v225_v39 = vmul.f32 1.442695, %v223_v37  ;;  %v227_v40 = vmul.f32 1.442695, %v224_v38 }
  0xb6   :  { %348 = vpow2.f32 %v225_v39 }
  0xb7   :  { %350 = vpow2.f32 %v227_v40 }
  0xbc   :  { %v349_v41 = vpop.eup %348 }
  0xbd   :  { %v351_v42 = vpop.eup %350  ;;  %v229_v43 = vmul.f32 %v349_v41, %v349_v41 }
  0xbe   :  { %v230_v44 = vmul.f32 %v351_v42, %v351_v42 }
  0xbf   :  { %v231_v45 = vadd.f32 %v349_v41, %v229_v43  ;;  %v233_v46 = vmul.f32 %v229_v43, %v229_v43 }
  0xc0   :  { %v232_v47 = vadd.f32 %v351_v42, %v230_v44  ;;  %v234_v48 = vmul.f32 %v230_v44, %v230_v44 }
  0xc1   :  { %v235_v49 = vadd.f32 %v233_v46, %v231_v45  ;;  %v237_v50 = vmul.f32 %v233_v46, %v233_v46 }
  0xc2   :  { %v236_v51 = vadd.f32 %v234_v48, %v232_v47  ;;  %v238_v52 = vmul.f32 %v234_v48, %v234_v48 }
  0xc3   :  { %v239_v53 = vadd.f32 %v237_v50, %v235_v49  ;;  %v241_v54 = vmul.f32 %v237_v50, %v237_v50 }
  0xc4   :  { %v240_v57 = vadd.f32 %v238_v52, %v236_v51  ;;  %v242_v58 = vmul.f32 %v238_v52, %v238_v52 }
  0xc5   :  { %v243_v56 = vadd.f32 %v241_v54, %v239_v53 }
  0xc6   :  { %v244_v61 = vadd.f32 %v242_v58, %v240_v57 }
  0xc7   :  { %v249_v59 = vmul.f32 %v347_v55, %v243_v56 }
  0xc8   :  { %v250_v62 = vmul.f32 %v347_v55, %v244_v61 }
  0xc9   :  { %v252_v60 = vsel %vm251_vm0, %v249_v59, 0.0 }
  0xca   :  { %253 = vadd.xlane.f32.xlu1 %v252_v60  ;;  %v255_v63 = vsel %vm251_vm0, %v250_v62, 0.0 }
  0xd2   :  { %256 = vadd.xlane.f32.xlu1 %v255_v63 }
 0x13d   :  { %v254_v0 = vpop.xlane.xlu1 %253 }
 0x13e   :  { %v260_v3 = vmul.f32 %v258_v1, %v254_v0 }
 0x140   :  { %v263_v6 = vsel %vm262_vm1, %v260_v3, 0.0 }
 0x145   :  { %v257_v4 = vpop.xlane.xlu1 %256 }
 0x146   :  { %v261_v5 = vmul.f32 %v259_v2, %v257_v4 }
 0x148   :  { %v264_v7 = vsel %vm262_vm1, %v261_v5, 0.0 }
 0x149   :  { %v265_v8 = vadd.f32 %v264_v7, %v263_v6 }
 0x14b   :  { %266 = vadd.xlane.f32.xlu2 %v265_v8 }
 0x1be   :  { %v267_v9 = vpop.xlane.xlu2 %266 }
 0x1bf   :  { %v268_v10 = vrot.slane %v267_v9, 4 }
 0x1c1   :  { %v269_v11 = vadd.f32 %v268_v10, %v267_v9 }
 0x1c3   :  { %v270_v12 = vrot.slane %v269_v11, 2 }
 0x1c5   :  { %v271_v13 = vadd.f32 %v270_v12, %v269_v11 }
 0x1c7   :  { %v272_v14 = vrot.slane %v271_v13, 1 }
 0x1c9   :  { %v273_v15 = vadd.f32 %v272_v14, %v271_v13 }
 0x1cb   :  { %340 = vpush %v273_v15 }
 0x1fc   :  { %s341_s22 = spop %340 }
 0x1fd   :  { %s278_s23 = smul.f32 %s341_s22, %s276_s21 }
 0x1ff   :  { %v279_v16 = vstv %s278_s23 }
 0x200   :  { %281 = vst [vmem:[%s504_s9] sm:$0xff] %v279_v16 }

</bundles_post_ra>
